<compile_context>
chip_gen: v7x
topology: tpu7x:2x2x1
jax: 0.10.0
libtpu: 0.0.40
codegen_flags: <defaults>
</compile_context>

<pallas_src>
import numpy as np
import jax
import jax.numpy as jnp
from jax.experimental import pallas as pl
from jax.experimental.pallas import tpu as pltpu


def _round_up(x: int, m: int) -> int:
    return (x + m - 1) // m * m


def _make_rel2col_kernel(n: int):
    """Kernel: per source row i, copy x_flat[:, i*n : i*n+i] -> out[:, tri_off(i) : tri_off(i)+i]."""

    def kernel(x_ref, o_ref):
        # x_ref: (tb, n*n) flattened matrices (batch tile)
        # o_ref: (tb, m)   strictly-lower-triangular entries, row-major (m = n*(n-1)//2)
        for i in range(1, n):  # static unroll; each is a masked lane load + rotate + masked store
            off = i * (i - 1) // 2
            o_ref[:, off:off + i] = x_ref[:, i * n:i * n + i]

    return kernel


def check_antisymmetric(rel_matrix, atol: float = 1e-6):
    """Opt-in debug equivalent of the torch `assert allclose(rel, -rel.T)`.

    Converting the result to a Python bool forces a device->host sync, so do NOT call this
    inside the jitted hot path.
    """
    return jnp.allclose(rel_matrix, -jnp.swapaxes(rel_matrix, -1, -2), atol=atol)


def rel_matrix_to_col(rel_matrix):
    """Pallas implementation of RelMatrix2Col.forward (strictly-lower-triangular gather)."""
    shape = rel_matrix.shape
    n, n2 = shape[-2], shape[-1]
    assert n == n2, "last two dims must be square"
    lead = shape[:-2]
    b = int(np.prod(lead)) if lead else 1
    k = n * n
    m = n * (n - 1) // 2
    dtype = jnp.dtype(rel_matrix.dtype)

    if m == 0 or b == 0:
        return jnp.zeros((*lead, m), dtype=dtype)

    x_flat = rel_matrix.reshape(b, k)

    itemsize = dtype.itemsize
    row_bytes = (k + m) * itemsize
    # Double-buffered in+out tiles must fit a conservative VMEM budget (safe on v5e/v6e/v7x).
    budget = 8 << 20
    tb_cap = max(8, (budget // (2 * row_bytes)) // 8 * 8)
    tb = int(min(512, tb_cap, _round_up(b, 8)))  # multiple of 8 sublanes
    grid = (pl.cdiv(b, tb),)                     # ragged batches: Pallas masks the partial block

    vmem_need = 2 * tb * row_bytes + (1 << 20)
    vmem_limit = int(min(32 << 20, max(16 << 20, vmem_need)))  # never above v7x physical 64 MiB

    out = pl.pallas_call(
        _make_rel2col_kernel(n),
        out_shape=jax.ShapeDtypeStruct((b, m), dtype),
        grid=grid,
        in_specs=[pl.BlockSpec((tb, k), lambda i: (i, 0))],
        # Last block dim == full array dim (m), so no lane padding / trailing slice pass needed.
        out_specs=pl.BlockSpec((tb, m), lambda i: (i, 0)),
        compiler_params=pltpu.CompilerParams(
            dimension_semantics=("parallel",),
            vmem_limit_bytes=vmem_limit,
        ),
        cost_estimate=pl.CostEstimate(
            flops=0,  # pure data movement, no MXU work
            transcendentals=0,
            bytes_accessed=b * (k + m) * itemsize,
        ),
    )(x_flat)

    return out.reshape(*lead, m)


if __name__ == "__main__":
    N = 16
    M = N * (N - 1) // 2
    ii, jj = np.meshgrid(np.arange(N), np.arange(N), indexing="ij")
    mask = ii > jj  # row > col, row-major order == torch boolean-mask indexing order

    # Case 1: B=2, jitted forward (module's assert done once outside the jitted hot path).
    a = jax.random.normal(jax.random.PRNGKey(0), (2, N, N), dtype=jnp.float32)
    rel = a - jnp.swapaxes(a, -1, -2)  # antisymmetric input
    assert bool(check_antisymmetric(rel))
    fwd = jax.jit(rel_matrix_to_col)
    out = jax.block_until_ready(fwd(rel))
    ref = np.asarray(rel)[..., mask]
    assert out.shape == (2, M), out.shape
    assert np.array_equal(np.asarray(out), ref), "mismatch vs reference (case 1)"

    # Case 2: extra leading dims; flattened batch (6) smaller than one sublane tile (8).
    a2 = jax.random.normal(jax.random.PRNGKey(1), (3, 2, N, N), dtype=jnp.float32)
    rel2 = a2 - jnp.swapaxes(a2, -1, -2)
    out2 = jax.block_until_ready(rel_matrix_to_col(rel2))
    ref2 = np.asarray(rel2)[..., mask]
    assert out2.shape == (3, 2, M), out2.shape
    assert np.array_equal(np.asarray(out2), ref2), "mismatch vs reference (case 2)"

    # Case 3: ragged multi-step batch (b % tb != 0) to exercise the masked partial last block.
    a3 = jax.random.normal(jax.random.PRNGKey(2), (1100, N, N), dtype=jnp.float32)
    rel3 = a3 - jnp.swapaxes(a3, -1, -2)
    out3 = jax.block_until_ready(jax.jit(rel_matrix_to_col)(rel3))
    ref3 = np.asarray(rel3)[..., mask]
    assert out3.shape == (1100, M), out3.shape
    assert np.array_equal(np.asarray(out3), ref3), "mismatch vs reference (case 3)"

    print("KERNEL_OK")
</pallas_src>

<mosaic_0001>
module attributes {stable_mosaic.version = 11 : i64} {
  func.func @kernel(%arg0: i32, %arg1: memref<8x256xf32, #tpu.memory_space<vmem>>, %arg2: memref<8x120xf32, #tpu.memory_space<vmem>>) attributes {dimension_semantics = [#tpu.dimension_semantics<parallel>], iteration_bounds = array<i64: 1>, scalar_prefetch = 0 : i64, scratch_operands = 0 : i64, tpu.core_type = #tpu.core_type<tc>, window_params = [{transform_indices = @transform_0, window_bounds = array<i64: 8, 256>}, {transform_indices = @transform_1, window_bounds = array<i64: 8, 120>}]} {
    %c0 = arith.constant 0 : index
    %c16 = arith.constant 16 : index
    %0 = vector.load %arg1[%c0, %c16] : memref<8x256xf32, #tpu.memory_space<vmem>>, vector<8x1xf32>
    %c0_0 = arith.constant 0 : index
    %c0_1 = arith.constant 0 : index
    %1 = vector.load %arg2[%c0_0, %c0_1] : memref<8x120xf32, #tpu.memory_space<vmem>>, vector<8x1xf32>
    tpu.vector_store %arg2[%c0_0, %c0_1], %0 {strides = array<i32>} : memref<8x120xf32, #tpu.memory_space<vmem>>, vector<8x1xf32>,
    %c0_2 = arith.constant 0 : index
    %c32 = arith.constant 32 : index
    %2 = vector.load %arg1[%c0_2, %c32] : memref<8x256xf32, #tpu.memory_space<vmem>>, vector<8x2xf32>
    %c0_3 = arith.constant 0 : index
    %c1 = arith.constant 1 : index
    %3 = vector.load %arg2[%c0_3, %c1] : memref<8x120xf32, #tpu.memory_space<vmem>>, vector<8x2xf32>
    tpu.vector_store %arg2[%c0_3, %c1], %2 {strides = array<i32>} : memref<8x120xf32, #tpu.memory_space<vmem>>, vector<8x2xf32>,
    %c0_4 = arith.constant 0 : index
    %c48 = arith.constant 48 : index
    %4 = vector.load %arg1[%c0_4, %c48] : memref<8x256xf32, #tpu.memory_space<vmem>>, vector<8x3xf32>
    %c0_5 = arith.constant 0 : index
    %c3 = arith.constant 3 : index
    %5 = vector.load %arg2[%c0_5, %c3] : memref<8x120xf32, #tpu.memory_space<vmem>>, vector<8x3xf32>
    tpu.vector_store %arg2[%c0_5, %c3], %4 {strides = array<i32>} : memref<8x120xf32, #tpu.memory_space<vmem>>, vector<8x3xf32>,
    %c0_6 = arith.constant 0 : index
    %c64 = arith.constant 64 : index
    %6 = vector.load %arg1[%c0_6, %c64] : memref<8x256xf32, #tpu.memory_space<vmem>>, vector<8x4xf32>
    %c0_7 = arith.constant 0 : index
    %c6 = arith.constant 6 : index
    %7 = vector.load %arg2[%c0_7, %c6] : memref<8x120xf32, #tpu.memory_space<vmem>>, vector<8x4xf32>
    tpu.vector_store %arg2[%c0_7, %c6], %6 {strides = array<i32>} : memref<8x120xf32, #tpu.memory_space<vmem>>, vector<8x4xf32>,
    %c0_8 = arith.constant 0 : index
    %c80 = arith.constant 80 : index
    %8 = vector.load %arg1[%c0_8, %c80] : memref<8x256xf32, #tpu.memory_space<vmem>>, vector<8x5xf32>
    %c0_9 = arith.constant 0 : index
    %c10 = arith.constant 10 : index
    %9 = vector.load %arg2[%c0_9, %c10] : memref<8x120xf32, #tpu.memory_space<vmem>>, vector<8x5xf32>
    tpu.vector_store %arg2[%c0_9, %c10], %8 {strides = array<i32>} : memref<8x120xf32, #tpu.memory_space<vmem>>, vector<8x5xf32>,
    %c0_10 = arith.constant 0 : index
    %c96 = arith.constant 96 : index
    %10 = vector.load %arg1[%c0_10, %c96] : memref<8x256xf32, #tpu.memory_space<vmem>>, vector<8x6xf32>
    %c0_11 = arith.constant 0 : index
    %c15 = arith.constant 15 : index
    %11 = vector.load %arg2[%c0_11, %c15] : memref<8x120xf32, #tpu.memory_space<vmem>>, vector<8x6xf32>
    tpu.vector_store %arg2[%c0_11, %c15], %10 {strides = array<i32>} : memref<8x120xf32, #tpu.memory_space<vmem>>, vector<8x6xf32>,
    %c0_12 = arith.constant 0 : index
    %c112 = arith.constant 112 : index
    %12 = vector.load %arg1[%c0_12, %c112] : memref<8x256xf32, #tpu.memory_space<vmem>>, vector<8x7xf32>
    %c0_13 = arith.constant 0 : index
    %c21 = arith.constant 21 : index
    %13 = vector.load %arg2[%c0_13, %c21] : memref<8x120xf32, #tpu.memory_space<vmem>>, vector<8x7xf32>
    tpu.vector_store %arg2[%c0_13, %c21], %12 {strides = array<i32>} : memref<8x120xf32, #tpu.memory_space<vmem>>, vector<8x7xf32>,
    %c0_14 = arith.constant 0 : index
    %c128 = arith.constant 128 : index
    %14 = vector.load %arg1[%c0_14, %c128] : memref<8x256xf32, #tpu.memory_space<vmem>>, vector<8x8xf32>
    %c0_15 = arith.constant 0 : index
    %c28 = arith.constant 28 : index
    %15 = vector.load %arg2[%c0_15, %c28] : memref<8x120xf32, #tpu.memory_space<vmem>>, vector<8x8xf32>
    tpu.vector_store %arg2[%c0_15, %c28], %14 {strides = array<i32>} : memref<8x120xf32, #tpu.memory_space<vmem>>, vector<8x8xf32>,
    %c0_16 = arith.constant 0 : index
    %c144 = arith.constant 144 : index
    %16 = vector.load %arg1[%c0_16, %c144] : memref<8x256xf32, #tpu.memory_space<vmem>>, vector<8x9xf32>
    %c0_17 = arith.constant 0 : index
    %c36 = arith.constant 36 : index
    %17 = vector.load %arg2[%c0_17, %c36] : memref<8x120xf32, #tpu.memory_space<vmem>>, vector<8x9xf32>
    tpu.vector_store %arg2[%c0_17, %c36], %16 {strides = array<i32>} : memref<8x120xf32, #tpu.memory_space<vmem>>, vector<8x9xf32>,
    %c0_18 = arith.constant 0 : index
    %c160 = arith.constant 160 : index
    %18 = vector.load %arg1[%c0_18, %c160] : memref<8x256xf32, #tpu.memory_space<vmem>>, vector<8x10xf32>
    %c0_19 = arith.constant 0 : index
    %c45 = arith.constant 45 : index
    %19 = vector.load %arg2[%c0_19, %c45] : memref<8x120xf32, #tpu.memory_space<vmem>>, vector<8x10xf32>
    tpu.vector_store %arg2[%c0_19, %c45], %18 {strides = array<i32>} : memref<8x120xf32, #tpu.memory_space<vmem>>, vector<8x10xf32>,
    %c0_20 = arith.constant 0 : index
    %c176 = arith.constant 176 : index
    %20 = vector.load %arg1[%c0_20, %c176] : memref<8x256xf32, #tpu.memory_space<vmem>>, vector<8x11xf32>
    %c0_21 = arith.constant 0 : index
    %c55 = arith.constant 55 : index
    %21 = vector.load %arg2[%c0_21, %c55] : memref<8x120xf32, #tpu.memory_space<vmem>>, vector<8x11xf32>
    tpu.vector_store %arg2[%c0_21, %c55], %20 {strides = array<i32>} : memref<8x120xf32, #tpu.memory_space<vmem>>, vector<8x11xf32>,
    %c0_22 = arith.constant 0 : index
    %c192 = arith.constant 192 : index
    %22 = vector.load %arg1[%c0_22, %c192] : memref<8x256xf32, #tpu.memory_space<vmem>>, vector<8x12xf32>
    %c0_23 = arith.constant 0 : index
    %c66 = arith.constant 66 : index
    %23 = vector.load %arg2[%c0_23, %c66] : memref<8x120xf32, #tpu.memory_space<vmem>>, vector<8x12xf32>
    tpu.vector_store %arg2[%c0_23, %c66], %22 {strides = array<i32>} : memref<8x120xf32, #tpu.memory_space<vmem>>, vector<8x12xf32>,
    %c0_24 = arith.constant 0 : index
    %c208 = arith.constant 208 : index
    %24 = vector.load %arg1[%c0_24, %c208] : memref<8x256xf32, #tpu.memory_space<vmem>>, vector<8x13xf32>
    %c0_25 = arith.constant 0 : index
    %c78 = arith.constant 78 : index
    %25 = vector.load %arg2[%c0_25, %c78] : memref<8x120xf32, #tpu.memory_space<vmem>>, vector<8x13xf32>
    tpu.vector_store %arg2[%c0_25, %c78], %24 {strides = array<i32>} : memref<8x120xf32, #tpu.memory_space<vmem>>, vector<8x13xf32>,
    %c0_26 = arith.constant 0 : index
    %c224 = arith.constant 224 : index
    %26 = vector.load %arg1[%c0_26, %c224] : memref<8x256xf32, #tpu.memory_space<vmem>>, vector<8x14xf32>
    %c0_27 = arith.constant 0 : index
    %c91 = arith.constant 91 : index
    %27 = vector.load %arg2[%c0_27, %c91] : memref<8x120xf32, #tpu.memory_space<vmem>>, vector<8x14xf32>
    tpu.vector_store %arg2[%c0_27, %c91], %26 {strides = array<i32>} : memref<8x120xf32, #tpu.memory_space<vmem>>, vector<8x14xf32>,
    %c0_28 = arith.constant 0 : index
    %c240 = arith.constant 240 : index
    %28 = vector.load %arg1[%c0_28, %c240] : memref<8x256xf32, #tpu.memory_space<vmem>>, vector<8x15xf32>
    %c0_29 = arith.constant 0 : index
    %c105 = arith.constant 105 : index
    %29 = vector.load %arg2[%c0_29, %c105] : memref<8x120xf32, #tpu.memory_space<vmem>>, vector<8x15xf32>
    tpu.vector_store %arg2[%c0_29, %c105], %28 {strides = array<i32>} : memref<8x120xf32, #tpu.memory_space<vmem>>, vector<8x15xf32>,
    return
  }
  func.func @transform_0(%arg0: i32) -> (i32, i32) {
    %c0_i32 = arith.constant 0 : i32
    %c0_i32_0 = arith.constant 0 : i32
    return %arg0, %c0_i32 : i32, i32
  }
  func.func @transform_1(%arg0: i32) -> (i32, i32) {
    %c0_i32 = arith.constant 0 : i32
    %c0_i32_0 = arith.constant 0 : i32
    return %arg0, %c0_i32 : i32, i32
  }
}

</mosaic_0001>

<bundles_post_ra>
// kernel: rel_matrix_to_col.1
= control target key start
LH: loop header
LB: loop body
LE: loop exit
PB: predicated region body
PF: predicated region fallthrough
CT: control target
= control target key end

     0   :  { %s577_s28 = smov 112   ;;  %s578_s29 = smov 83   ;;  %s708_s0 = inlined_call_operand.vmem [shape: f32[2,256], index: 0, kind: input, shape index: {}]   ;;  %s709_s1 = inlined_call_operand.hbm [shape: f32[2,120], index: 1, kind: output, shape index: {}]  }
   0x1   :  { %v523_v0 = vld.sshfl [vmem:[%s708_s0] sm:$0xf pattern:$0x76325410]  ;;  %s579_s7 = smov 97   ;;  %s580_s8 = smov 70  }
   0x2   :  { %v524_v1 = vld.sshfl [vmem:[%s708_s0 + $0x8] sm:$0xf pattern:$0x76325410]  ;;  %s581_s17 = smov 58   ;;  %s582_s18 = smov 47  }
   0x3   :  { %v525_v2 = vld.sshfl [vmem:[%s708_s0] sm:$0xf pattern:$0x76325410]  ;;  %v33_v9 = vcombine.low %v523_v0, %v524_v1  ;;  %s583_s27 = smov 37   ;;  %s586_s9 = smov 13  }
   0x4   :  { %v526_v3 = vld.sshfl [vmem:[%s708_s0 + $0x8] sm:$0xf pattern:$0x76325410]  ;;  %s588_s19 = smov 2  }
   0x5   :  { %v527_v4 = vld.sshfl [vmem:[%s708_s0] sm:$0xf pattern:$0x76325410]  ;;  %v93_v10 = vcombine.low %v525_v2, %v526_v3  ;;  %34 = vrot.lane.b32.xlu0 %v33_v9, %s577_s28  ;;  %s584_s28 = smov 28  }
   0x6   :  { %v528_v5 = vld.sshfl [vmem:[%s708_s0 + $0x8] sm:$0xf pattern:$0x76325410] }
   0x7   :  { %v529_v6 = vld.sshfl [vmem:[%s708_s0] sm:$0xf pattern:$0x76325410]  ;;  %94 = vrot.lane.b32.xlu1 %v93_v10, %s578_s29  ;;  %v63_v13 = vcombine.low %v527_v4, %v528_v5 }
   0x8   :  { %v530_v7 = vld.sshfl [vmem:[%s708_s0 + $0x8] sm:$0xf pattern:$0x76325410] }
   0x9   :  { %v531_v8 = vld.sshfl [vmem:[%s708_s0] sm:$0xf pattern:$0x76325410]  ;;  %v123_v14 = vcombine.low %v529_v6, %v530_v7  ;;  %64 = vrot.lane.b32.xlu0 %v63_v13, %s579_s7 }
   0xa   :  { %v532_v11 = vld.sshfl [vmem:[%s708_s0 + $0x8] sm:$0xf pattern:$0x76325410] }
   0xb   :  { %v533_v12 = vld.sshfl [vmem:[%s708_s0] sm:$0xf pattern:$0x76325410]  ;;  %v153_v18 = vcombine.low %v531_v8, %v532_v11  ;;  %124 = vrot.lane.b32.xlu1 %v123_v14, %s580_s8  ;;  %s585_s8 = smov 20  }
   0xc   :  { %v534_v15 = vld.sshfl [vmem:[%s708_s0 + $0x8] sm:$0xf pattern:$0x76325410] }
   0xd   :  { %v535_v16 = vld.sshfl [vmem:[%s708_s0] sm:$0xf pattern:$0x76325410]  ;;  %v183_v19 = vcombine.low %v533_v12, %v534_v15  ;;  %154 = vrot.lane.b32.xlu0 %v153_v18, %s581_s17 }
   0xe   :  { %v536_v17 = vld.sshfl [vmem:[%s708_s0 + $0x8] sm:$0xf pattern:$0x76325410] }
   0xf   :  { %v537_v20 = vld.sshfl [vmem:[%s708_s0 + $0x2] sm:$0xf pattern:$0x76325410]  ;;  %v213_v24 = vcombine.low %v535_v16, %v536_v17  ;;  %184 = vrot.lane.b32.xlu1 %v183_v19, %s582_s18  ;;  %s587_s18 = smov 7  }
  0x10   :  { %v538_v21 = vld.sshfl [vmem:[%s708_s0 + $0xa] sm:$0xf pattern:$0x76325410] }
  0x11   :  { %v539_v22 = vld.sshfl [vmem:[%s708_s0 + $0x2] sm:$0xf pattern:$0x76325410]  ;;  %v243_v25 = vcombine.low %v537_v20, %v538_v21  ;;  %214 = vrot.lane.b32.xlu0 %v213_v24, %s583_s27 }
  0x12   :  { %v540_v23 = vld.sshfl [vmem:[%s708_s0 + $0xa] sm:$0xf pattern:$0x76325410] }
  0x13   :  { %v541_v26 = vld.sshfl [vmem:[%s708_s0 + $0x2] sm:$0xf pattern:$0x76325410]  ;;  %244 = vrot.lane.b32.xlu1 %v243_v25, %s584_s28  ;;  %v273_v30 = vcombine.low %v539_v22, %v540_v23 }
  0x14   :  { %v542_v27 = vld.sshfl [vmem:[%s708_s0 + $0xa] sm:$0xf pattern:$0x76325410] }
  0x15   :  { %v543_v28 = vld.sshfl [vmem:[%s708_s0 + $0x2] sm:$0xf pattern:$0x76325410]  ;;  %v303_v31 = vcombine.low %v541_v26, %v542_v27  ;;  %274 = vrot.lane.b32.xlu0 %v273_v30, %s585_s8 }
  0x16   :  { %v544_v29 = vld.sshfl [vmem:[%s708_s0 + $0xa] sm:$0xf pattern:$0x76325410] }
  0x17   :  { %v545_v32 = vld.sshfl [vmem:[%s708_s0 + $0x2] sm:$0xf pattern:$0x76325410]  ;;  %304 = vrot.lane.b32.xlu1 %v303_v31, %s586_s9  ;;  %v333_v36 = vcombine.low %v543_v28, %v544_v29 }
  0x18   :  { %v546_v33 = vld.sshfl [vmem:[%s708_s0 + $0xa] sm:$0xf pattern:$0x76325410] }
  0x19   :  { %v547_v34 = vld.sshfl [vmem:[%s708_s0 + $0x2] sm:$0xf pattern:$0x76325410]  ;;  %v363_v37 = vcombine.low %v545_v32, %v546_v33  ;;  %334 = vrot.lane.b32.xlu0 %v333_v36, %s587_s18 }
  0x1a   :  { %v548_v35 = vld.sshfl [vmem:[%s708_s0 + $0xa] sm:$0xf pattern:$0x76325410] }
  0x1b   :  { %v549_v38 = vld.sshfl [vmem:[%s708_s0 + $0x2] sm:$0xf pattern:$0x76325410]  ;;  %364 = vrot.lane.b32.xlu1 %v363_v37, %s588_s19  ;;  %v393_v42 = vcombine.low %v547_v34, %v548_v35 }
  0x1c   :  { %v550_v39 = vld.sshfl [vmem:[%s708_s0 + $0xa] sm:$0xf pattern:$0x76325410] }
  0x1d   :  { %v551_v40 = vld.sshfl [vmem:[%s708_s0 + $0x2] sm:$0xf pattern:$0x76325410] }
  0x1e   :  { %v552_v41 = vld.sshfl [vmem:[%s708_s0 + $0xa] sm:$0xf pattern:$0x76325410] }
  0x1f   :  { %6 = vsyncpa [#allocation3], 0  ;;  %v423_v43 = vcombine.low %v549_v38, %v550_v39  ;;  %s589_s20 = smov 126   ;;  %s590_s21 = smov 123   ;;  %v453_v44 = vcombine.low %v551_v40, %v552_v41  ;;  %vm37_vm0 = vcmask 7168   ;;  %vm67_vm1 = vcmask 23560  }
  0x20   :  { %394 = vrot.lane.b32.xlu0 %v393_v42, %s589_s20  ;;  %s591_s22 = smov 121   ;;  %vm97_vm2 = vcmask 48152   ;;  %vm127_vm3 = vcmask 80944   ;;  %vm157_vm4 = vcmask 121936   ;;  %vm187_vm5 = vcmask 171128  }
  0x21   :  { %424 = vrot.lane.b32.xlu1 %v423_v43, %s590_s21  ;;  %vm217_vm6 = vcmask 228520   ;;  %vm247_vm7 = vcmask 294112   ;;  %vm277_vm8 = vcmask 367904   ;;  %vm307_vm9 = vcmask 449896  }
  0x22   :  { %vm337_vm10 = vcmask 540088   ;;  %vm367_vm11 = vcmask 638480   ;;  %vm397_vm12 = vcmask 745072   ;;  %vm427_vm13 = vcmask 859864  }
  0x23   :  { %vm457_vm14 = vcmask 982856  }
  0x24   :  { %454 = vrot.lane.b32.xlu0 %v453_v44, %s591_s22 }
  0x77   :  { %v35_v45 = vpop.permute.xlu0 %34 }
  0x78   :  { %38 = vst.msk [vmem:[#allocation2] sm:$0xff] %vm37_vm0, %v35_v45 }
  0x79   :  { %v95_v46 = vpop.permute.xlu1 %94 }
  0x7b   :  { %v65_v47 = vpop.permute.xlu0 %64 }
  0x7c   :  { %68 = vst.msk [vmem:[#allocation2] sm:$0xff] %vm67_vm1, %v65_v47 }
  0x7d   :  { %v125_v48 = vpop.permute.xlu1 %124  ;;  %98 = vst.msk [vmem:[#allocation2] sm:$0xff] %vm97_vm2, %v95_v46 }
  0x7e   :  { %128 = vst.msk [vmem:[#allocation2] sm:$0xff] %vm127_vm3, %v125_v48 }
  0x7f   :  { %v155_v49 = vpop.permute.xlu0 %154 }
  0x80   :  { %158 = vst.msk [vmem:[#allocation2] sm:$0xff] %vm157_vm4, %v155_v49 }
  0x81   :  { %v185_v50 = vpop.permute.xlu1 %184 }
  0x82   :  { %188 = vst.msk [vmem:[#allocation2] sm:$0xff] %vm187_vm5, %v185_v50 }
  0x83   :  { %v215_v51 = vpop.permute.xlu0 %214 }
  0x84   :  { %218 = vst.msk [vmem:[#allocation2] sm:$0xff] %vm217_vm6, %v215_v51 }
  0x85   :  { %v245_v52 = vpop.permute.xlu1 %244 }
  0x86   :  { %248 = vst.msk [vmem:[#allocation2] sm:$0xff] %vm247_vm7, %v245_v52 }
  0x87   :  { %v275_v53 = vpop.permute.xlu0 %274 }
  0x88   :  { %278 = vst.msk [vmem:[#allocation2] sm:$0xff] %vm277_vm8, %v275_v53 }
  0x89   :  { %v305_v54 = vpop.permute.xlu1 %304 }
  0x8a   :  { %308 = vst.msk [vmem:[#allocation2] sm:$0xff] %vm307_vm9, %v305_v54 }
  0x8b   :  { %v335_v55 = vpop.permute.xlu0 %334 }
  0x8c   :  { %338 = vst.msk [vmem:[#allocation2] sm:$0xff] %vm337_vm10, %v335_v55 }
  0x8d   :  { %v365_v56 = vpop.permute.xlu1 %364 }
  0x8e   :  { %368 = vst.msk [vmem:[#allocation2] sm:$0xff] %vm367_vm11, %v365_v56 }
  0x92   :  { %v395_v57 = vpop.permute.xlu0 %394 }
  0x93   :  { %v425_v58 = vpop.permute.xlu1 %424  ;;  %398 = vst.msk [vmem:[#allocation2] sm:$0xff] %vm397_vm12, %v395_v57 }
  0x94   :  { %428 = vst.msk [vmem:[#allocation2] sm:$0xff] %vm427_vm13, %v425_v58 }
  0x96   :  { %v455_v59 = vpop.permute.xlu0 %454 }
  0x97   :  { %458 = vst.msk [vmem:[#allocation2] sm:$0xff] %vm457_vm14, %v455_v59 }
  0x98   :  { %463 = vsyncadd [#allocation3], 96  ;;  %s592_s0 = smov [#allocation2]  }
  0x99   :  { %s464_s23 = sshll.u32 %s592_s0, 4  ;;  %s465_s23 = int_to_ptr.vmem [resolvable:$true] %s464_s23 }
  0x9a   :  { %s553_s24 = scalar_lea.vmem %s465_s23, 32  ;;  %s557_s25 = scalar_lea.vmem %s465_s23, 128 }
  0x9b   :  { %p554_p0 = scmp.ne.s32.totalorder %s465_s23, %s553_s24  ;;  %p558_p1 = scmp.lt.s32.totalorder %s465_s23, %s465_s23 }
  0x9c   :  { %p559_p2 = scmp.lt.s32.totalorder %s557_s25, %s553_s24 }
  0x9e   :  { %p560_p3 = por %p559_p2, %p558_p1 }
  0xa0   :  { %p561_p4 = pnand %p560_p3, %p554_p0 }
  0xa2   :  { %564 = shalt.err (!%p561_p4)
}
  0xa3   :  { %s565_s28 = scalar_lea.hbm %s709_s1, 32 }
  0xa4   :  { %p566_p5 = scmp.ne.s32.totalorder %s709_s1, %s565_s28  ;;  %p569_p6 = scmp.lt.u32.totalorder %s565_s28, %s709_s1 }
  0xa6   :  { %p571_p7 = pnand %p569_p6, %p566_p5 }
  0xa8   :  { %574 = shalt.err (!%p571_p7)
}
  0xa9   :  { %s593_s4 = smov 32  }
  0xaa   :  { %470 = dma.vmem_to_hbm [thread:$0]  %s465_s23, 32, %s709_s1, [#allocation3], %s593_s4, %s593_s4, %s588_s19  }
  0xab   :  { %575 = dma.done.wait [#allocation3], 128  }
  0xac   :  { %576 = vsyncadd [#allocation3], 4294967168 }
  0xad   :  { %474 = vsyncpa [#allocation3], 1 }

</bundles_post_ra>
